<compile_context>
chip_gen: v7x
topology: tpu7x:2x2x1
jax: 0.10.0
libtpu: 0.0.40
codegen_flags: <defaults>
</compile_context>

<pallas_src>
import functools

import jax
import jax.numpy as jnp
from jax.experimental import pallas as pl
from jax.experimental.pallas import tpu as pltpu

EPS = 0.001


def _round_up(x, m):
    return ((x + m - 1) // m) * m


def _cdiv(a, b):
    return (a + b - 1) // b


def _device_config():
    """Per-chip-generation tiling / VMEM / sharding knobs."""
    try:
        kind = jax.devices()[0].device_kind.lower()
    except Exception:  # pragma: no cover - CPU interpret fallback etc.
        kind = ""
    if "v7" in kind:
        # 64 MiB physical VMEM, 3.2 TB/s HBM: bigger steps amortize the
        # ~0.35us per-grid-step cost; leave headroom under 64 MiB.
        return dict(num_shards=2, tile_budget=32 << 20, vmem_limit=48 << 20)
    if "v6" in kind:
        # 128 MiB physical VMEM, ~1.4 TB/s HBM.
        return dict(num_shards=1, tile_budget=16 << 20, vmem_limit=64 << 20)
    # v5e and anything unknown: firmly HBM-bound, keep the modest budget.
    return dict(num_shards=1, tile_budget=8 << 20, vmem_limit=32 << 20)


def _mls_kernel(mu1_ref, mu2_ref, ls1_ref, ls2_ref, acc_ref, *,
                eps, tb, d, b_valid, tiles_per_shard, has_ragged,
                first_partial_tile, exact_divide):
    s = pl.program_id(0)
    t = pl.program_id(1)

    # The (8, D) output block is the resident accumulator for this shard.
    @pl.when(t == 0)
    def _init():
        acc_ref[...] = jnp.zeros_like(acc_ref)

    mu1 = mu1_ref[...].astype(jnp.float32)
    mu2 = mu2_ref[...].astype(jnp.float32)
    ls1 = ls1_ref[...].astype(jnp.float32)
    ls2 = ls2_ref[...].astype(jnp.float32)

    diff = mu1 - mu2
    item1 = diff * diff                        # == mu1^2 + mu2^2 - 2*mu1*mu2
    denom = jnp.exp(ls1) + jnp.exp(ls2) + eps  # sigma1 + sigma2 + eps
    item3 = jnp.log(denom)

    if exact_divide:
        loss = item1 / denom + item3
    else:
        # EUP approximate reciprocal + one Newton-Raphson step -> ~f32 accuracy.
        r = pl.reciprocal(denom, approx=True)
        r = r * (2.0 - denom * r)
        loss = item1 * r + item3

    def _accumulate(vals):
        # Fold the (TB, D) tile onto the (8, D) accumulator: the sublane-split
        # reshape is a no-op relayout and the axis-0 sum is pure VPU adds.
        acc_ref[...] += jnp.sum(vals.reshape(tb // 8, 8, d), axis=0)

    if has_ragged:
        gtile = s * tiles_per_shard + t
        is_ragged_tile = gtile >= first_partial_tile

        @pl.when(is_ragged_tile)
        def _masked():
            # Only the ragged/overhanging tile(s) pay for iota + select.
            # jnp.where (select) is mandatory here: out-of-range rows hold
            # unspecified data and may be inf/NaN after exp/log.
            row0 = gtile * tb
            rows = row0 + jax.lax.broadcasted_iota(jnp.int32, (tb, 1), 0)
            _accumulate(jnp.where(rows < b_valid, loss, 0.0))

        @pl.when(jnp.logical_not(is_ragged_tile))
        def _full():
            _accumulate(loss)
    else:
        _accumulate(loss)


def mls_loss(mu_1, mu_2, logsigma1, logsigma2, eps=EPS, *,
             exact_divide=False, max_rows_per_tile=None):
    """Pallas implementation of MLSLoss.forward. Inputs: (B, D)."""
    B, D = mu_1.shape
    itemsize = jnp.dtype(mu_1.dtype).itemsize
    cfg = _device_config()

    # Two partial-sum shards only where a second TensorCore exists (v7x).
    num_shards = cfg["num_shards"] if B >= 16 else 1

    # Rows per tile: keep 4 inputs x 2 pipeline buffers within the budget.
    tb = cfg["tile_budget"] // (4 * 2 * D * itemsize)
    if max_rows_per_tile is not None:          # testing / override hook
        tb = min(tb, max_rows_per_tile)
    tb = max(8, (tb // 8) * 8)

    rows_per_shard = _cdiv(B, num_shards)
    tb = min(tb, _round_up(rows_per_shard, 8))

    total_tiles = _cdiv(B, tb)
    if num_shards > total_tiles:
        num_shards = 1
    tiles_per_shard = _cdiv(total_tiles, num_shards)

    covered_rows = num_shards * tiles_per_shard * tb
    has_ragged = covered_rows != B             # any tile with rows >= B?
    first_partial_tile = B // tb               # first (global) tile to mask

    kernel = functools.partial(
        _mls_kernel, eps=float(eps), tb=tb, d=D, b_valid=B,
        tiles_per_shard=tiles_per_shard, has_ragged=has_ragged,
        first_partial_tile=first_partial_tile, exact_divide=exact_divide)

    in_spec = pl.BlockSpec((tb, D), lambda s, t: (s * tiles_per_shard + t, 0))
    out_spec = pl.BlockSpec((8, D), lambda s, t: (s, 0))

    cost = pl.CostEstimate(
        flops=8 * covered_rows * D,
        transcendentals=3 * covered_rows * D,
        bytes_accessed=4 * covered_rows * D * itemsize + num_shards * 8 * D * 4,
    )

    partials = pl.pallas_call(
        kernel,
        out_shape=jax.ShapeDtypeStruct((num_shards * 8, D), jnp.float32),
        grid_spec=pltpu.PrefetchScalarGridSpec(
            num_scalar_prefetch=0,
            grid=(num_shards, tiles_per_shard),
            in_specs=[in_spec, in_spec, in_spec, in_spec],
            out_specs=out_spec,
        ),
        compiler_params=pltpu.CompilerParams(
            dimension_semantics=("parallel", "arbitrary"),
            vmem_limit_bytes=cfg["vmem_limit"],
        ),
        cost_estimate=cost,
    )(mu_1, mu_2, logsigma1, logsigma2)

    # sum over dim=1 then mean over batch == total sum / B
    return (jnp.sum(partials) / B).astype(jnp.float32)


def mls_loss_ref(mu_1, mu_2, logsigma1, logsigma2, eps=EPS):
    sigma1 = jnp.exp(logsigma1)
    sigma2 = jnp.exp(logsigma2)
    item1 = mu_1 ** 2 + mu_2 ** 2 - 2 * mu_1 * mu_2
    item2 = sigma1 + sigma2
    item3 = jnp.log(sigma1 + sigma2 + eps)
    loss = item1 / (item2 + eps) + item3
    loss = jnp.sum(loss, axis=1)
    return jnp.mean(loss)


if __name__ == "__main__":
    key = jax.random.PRNGKey(0)
    k1, k2, k3, k4 = jax.random.split(key, 4)

    # B=24 (not a multiple of 8*tiles for some tilings) exercises the
    # single-tile, multi-tile and ragged/masked code paths below.
    B, D = 24, 128
    mu_1 = jax.random.normal(k1, (B, D), dtype=jnp.float32)
    mu_2 = jax.random.normal(k2, (B, D), dtype=jnp.float32)
    logsigma1 = 0.1 * jax.random.normal(k3, (B, D), dtype=jnp.float32)
    logsigma2 = 0.1 * jax.random.normal(k4, (B, D), dtype=jnp.float32)

    ref = jax.block_until_ready(mls_loss_ref(mu_1, mu_2, logsigma1, logsigma2))

    # Default path (big tile, NR-refined approximate reciprocal).
    out = jax.block_until_ready(mls_loss(mu_1, mu_2, logsigma1, logsigma2))
    assert jnp.allclose(out, ref, rtol=1e-4, atol=1e-4), (out, ref)

    # Exact-divide path.
    out_exact = jax.block_until_ready(
        mls_loss(mu_1, mu_2, logsigma1, logsigma2, exact_divide=True))
    assert jnp.allclose(out_exact, ref, rtol=1e-5, atol=1e-5), (out_exact, ref)

    # Multi-tile, exactly divisible (no mask emitted).
    out_t8 = jax.block_until_ready(
        mls_loss(mu_1, mu_2, logsigma1, logsigma2, max_rows_per_tile=8))
    assert jnp.allclose(out_t8, ref, rtol=1e-4, atol=1e-4), (out_t8, ref)

    # Multi-tile with a ragged last tile (in-kernel masked accumulate path).
    out_t16 = jax.block_until_ready(
        mls_loss(mu_1, mu_2, logsigma1, logsigma2, max_rows_per_tile=16))
    assert jnp.allclose(out_t16, ref, rtol=1e-4, atol=1e-4), (out_t16, ref)

    # Larger ragged case: 4 tiles, last tile only 2 valid rows.
    B2, D2 = 50, 256
    j1, j2, j3, j4 = jax.random.split(jax.random.PRNGKey(1), 4)
    a1 = jax.random.normal(j1, (B2, D2), dtype=jnp.float32)
    a2 = jax.random.normal(j2, (B2, D2), dtype=jnp.float32)
    l1 = 0.1 * jax.random.normal(j3, (B2, D2), dtype=jnp.float32)
    l2 = 0.1 * jax.random.normal(j4, (B2, D2), dtype=jnp.float32)
    ref2 = jax.block_until_ready(mls_loss_ref(a1, a2, l1, l2))
    out2 = jax.block_until_ready(
        mls_loss(a1, a2, l1, l2, max_rows_per_tile=16))
    assert jnp.allclose(out2, ref2, rtol=1e-4, atol=1e-4), (out2, ref2)

    print("KERNEL_OK")
</pallas_src>

<mosaic_0001>
module attributes {stable_mosaic.version = 11 : i64} {
  func.func @_mls_kernel(%arg0: i32, %arg1: i32, %arg2: memref<24x128xf32, #tpu.memory_space<vmem>>, %arg3: memref<24x128xf32, #tpu.memory_space<vmem>>, %arg4: memref<24x128xf32, #tpu.memory_space<vmem>>, %arg5: memref<24x128xf32, #tpu.memory_space<vmem>>, %arg6: memref<8x128xf32, #tpu.memory_space<vmem>>) attributes {dimension_semantics = [#tpu.dimension_semantics<parallel>, #tpu.dimension_semantics<arbitrary>], iteration_bounds = array<i64: 1, 1>, scalar_prefetch = 0 : i64, scratch_operands = 0 : i64, tpu.core_type = #tpu.core_type<tc>, window_params = [{transform_indices = @transform_0, window_bounds = array<i64: 24, 128>}, {transform_indices = @transform_1, window_bounds = array<i64: 24, 128>}, {transform_indices = @transform_2, window_bounds = array<i64: 24, 128>}, {transform_indices = @transform_3, window_bounds = array<i64: 24, 128>}, {transform_indices = @transform_4, window_bounds = array<i64: 8, 128>}]} {
    %c0_i32 = arith.constant 0 : i32
    %0 = arith.cmpi eq, %arg1, %c0_i32 : i32
    %1 = arith.extui %0 : i1 to i32
    %c0_i32_0 = arith.constant 0 : i32
    %2 = arith.cmpi ne, %1, %c0_i32_0 : i32
    scf.if %2 {
      %cst_14 = arith.constant 0.000000e+00 : f32
      %27 = vector.broadcast %cst_14 : f32 to vector<8x128xf32>
      %c0_15 = arith.constant 0 : index
      %c0_16 = arith.constant 0 : index
      %28 = vector.load %arg6[%c0_15, %c0_16] : memref<8x128xf32, #tpu.memory_space<vmem>>, vector<8x128xf32>
      tpu.vector_store %arg6[%c0_15, %c0_16], %27 {strides = array<i32>} : memref<8x128xf32, #tpu.memory_space<vmem>>, vector<8x128xf32>,
    } else {
    }
    %c0 = arith.constant 0 : index
    %c0_1 = arith.constant 0 : index
    %3 = vector.load %arg2[%c0, %c0_1] : memref<24x128xf32, #tpu.memory_space<vmem>>, vector<24x128xf32>
    %c0_2 = arith.constant 0 : index
    %c0_3 = arith.constant 0 : index
    %4 = vector.load %arg3[%c0_2, %c0_3] : memref<24x128xf32, #tpu.memory_space<vmem>>, vector<24x128xf32>
    %c0_4 = arith.constant 0 : index
    %c0_5 = arith.constant 0 : index
    %5 = vector.load %arg4[%c0_4, %c0_5] : memref<24x128xf32, #tpu.memory_space<vmem>>, vector<24x128xf32>
    %c0_6 = arith.constant 0 : index
    %c0_7 = arith.constant 0 : index
    %6 = vector.load %arg5[%c0_6, %c0_7] : memref<24x128xf32, #tpu.memory_space<vmem>>, vector<24x128xf32>
    %7 = arith.subf %3, %4 : vector<24x128xf32>
    %8 = arith.mulf %7, %7 : vector<24x128xf32>
    %9 = math.exp %5 : vector<24x128xf32>
    %10 = math.exp %6 : vector<24x128xf32>
    %11 = arith.addf %9, %10 : vector<24x128xf32>
    %cst = arith.constant 1.000000e-03 : f32
    %12 = vector.broadcast %cst : f32 to vector<24x128xf32>
    %13 = arith.addf %11, %12 : vector<24x128xf32>
    %14 = math.log %13 : vector<24x128xf32>
    %15 = tpu.reciprocal %13 {approx = true} : vector<24x128xf32> -> vector<24x128xf32>
    %16 = arith.mulf %13, %15 : vector<24x128xf32>
    %cst_8 = arith.constant 2.000000e+00 : f32
    %17 = vector.broadcast %cst_8 : f32 to vector<24x128xf32>
    %18 = arith.subf %17, %16 : vector<24x128xf32>
    %19 = arith.mulf %15, %18 : vector<24x128xf32>
    %20 = arith.mulf %8, %19 : vector<24x128xf32>
    %21 = arith.addf %20, %14 : vector<24x128xf32>
    %c0_9 = arith.constant 0 : index
    %c0_10 = arith.constant 0 : index
    %22 = vector.load %arg6[%c0_9, %c0_10] : memref<8x128xf32, #tpu.memory_space<vmem>>, vector<8x128xf32>
    %23 = vector.shape_cast %21 : vector<24x128xf32> to vector<3x8x128xf32>
    %cst_11 = arith.constant dense<0.000000e+00> : vector<8x128xf32>
    %24 = vector.multi_reduction <add>, %23, %cst_11 [0] : vector<3x8x128xf32> to vector<8x128xf32>
    %25 = arith.addf %22, %24 : vector<8x128xf32>
    %c0_12 = arith.constant 0 : index
    %c0_13 = arith.constant 0 : index
    %26 = vector.load %arg6[%c0_12, %c0_13] : memref<8x128xf32, #tpu.memory_space<vmem>>, vector<8x128xf32>
    tpu.vector_store %arg6[%c0_12, %c0_13], %25 {strides = array<i32>} : memref<8x128xf32, #tpu.memory_space<vmem>>, vector<8x128xf32>,
    return
  }
  func.func @transform_0(%arg0: i32, %arg1: i32) -> (i32, i32) {
    %c1_i32 = arith.constant 1 : i32
    %0 = arith.muli %arg0, %c1_i32 : i32
    %1 = arith.addi %0, %arg1 : i32
    %c0_i32 = arith.constant 0 : i32
    %c0_i32_0 = arith.constant 0 : i32
    return %1, %c0_i32 : i32, i32
  }
  func.func @transform_1(%arg0: i32, %arg1: i32) -> (i32, i32) {
    %c1_i32 = arith.constant 1 : i32
    %0 = arith.muli %arg0, %c1_i32 : i32
    %1 = arith.addi %0, %arg1 : i32
    %c0_i32 = arith.constant 0 : i32
    %c0_i32_0 = arith.constant 0 : i32
    return %1, %c0_i32 : i32, i32
  }
  func.func @transform_2(%arg0: i32, %arg1: i32) -> (i32, i32) {
    %c1_i32 = arith.constant 1 : i32
    %0 = arith.muli %arg0, %c1_i32 : i32
    %1 = arith.addi %0, %arg1 : i32
    %c0_i32 = arith.constant 0 : i32
    %c0_i32_0 = arith.constant 0 : i32
    return %1, %c0_i32 : i32, i32
  }
  func.func @transform_3(%arg0: i32, %arg1: i32) -> (i32, i32) {
    %c1_i32 = arith.constant 1 : i32
    %0 = arith.muli %arg0, %c1_i32 : i32
    %1 = arith.addi %0, %arg1 : i32
    %c0_i32 = arith.constant 0 : i32
    %c0_i32_0 = arith.constant 0 : i32
    return %1, %c0_i32 : i32, i32
  }
  func.func @transform_4(%arg0: i32, %arg1: i32) -> (i32, i32) {
    %c0_i32 = arith.constant 0 : i32
    %c0_i32_0 = arith.constant 0 : i32
    return %arg0, %c0_i32 : i32, i32
  }
}

</mosaic_0001>

<bundles_post_ra>
// kernel: tpu_custom_call.1
= control target key start
LH: loop header
LB: loop body
LE: loop exit
PB: predicated region body
PF: predicated region fallthrough
CT: control target
= control target key end

     0   :  { %9 = vsyncpa [#allocation3], 0  ;;  %s452_s0 = inlined_call_operand.hbm [shape: f32[24,128], index: 0, kind: input, shape index: {}]   ;;  %s453_s1 = inlined_call_operand.hbm [shape: f32[24,128], index: 1, kind: input, shape index: {}]   ;;  %s454_s2 = inlined_call_operand.hbm [shape: f32[24,128], index: 2, kind: input, shape index: {}]   ;;  %s455_s3 = inlined_call_operand.hbm [shape: f32[24,128], index: 3, kind: input, shape index: {}]   ;;  %s456_s4 = inlined_call_operand.hbm [shape: f32[8,128], index: 4, kind: output, shape index: {}]  }
   0x1   :  { %10 = vsyncpa [#allocation6], 0 }
   0x2   :  { %11 = vsyncpa [#allocation9], 0 }
   0x3   :  { %12 = vsyncpa [#allocation4], 0  ;;  %s334_s15 = smov [#allocation5]   ;;  %s335_s17 = smov [#allocation2]  }
   0x4   :  { %s38_s16 = sshll.u32 %s334_s15, 4  ;;  %s22_s18 = sshll.u32 %s335_s17, 4  ;;  %s39_s16 = int_to_ptr.vmem [resolvable:$true] %s38_s16  ;;  %s366_s18 = int_to_ptr.vmem [resolvable:$true] %s22_s18 }
   0x5   :  { %s216_s21 = scalar_lea.hbm %s453_s1, 384 }
   0x6   :  { %p217_p0 = scmp.ne.s32.totalorder %s453_s1, %s216_s21  ;;  %p220_p1 = scmp.lt.u32.totalorder %s216_s21, %s453_s1 }
   0x8   :  { %p222_p2 = pnand %p220_p1, %p217_p0 }
   0xa   :  { %225 = shalt.err (!%p222_p2)
}
   0xb   :  { %s226_s26 = scalar_lea.vmem %s39_s16, 384  ;;  %p231_p4 = scmp.lt.s32.totalorder %s39_s16, %s39_s16 }
   0xc   :  { %p227_p3 = scmp.ne.s32.totalorder %s39_s16, %s226_s26  ;;  %p232_p5 = scmp.lt.s32.totalorder %s226_s26, %s226_s26 }
   0xe   :  { %p233_p6 = por %p232_p5, %p231_p4 }
  0x10   :  { %p234_p7 = pnand %p233_p6, %p227_p3 }
  0x12   :  { %237 = shalt.err (!%p234_p7)
}
  0x13   :  { %s336_s27 = smov 128   ;;  %s337_s28 = smov 8  }
  0x14   :  { %44 = dma.hbm_to_vmem [thread:$0]  %s453_s1, 384, %s39_s16, [#allocation6], %s336_s27, %s336_s27, %s337_s28  }
  0x15   :  { %s238_s7 = scalar_lea.hbm %s452_s0, 384 }
  0x16   :  { %p239_p8 = scmp.ne.s32.totalorder %s452_s0, %s238_s7  ;;  %p242_p9 = scmp.lt.u32.totalorder %s238_s7, %s452_s0 }
  0x18   :  { %p244_p10 = pnand %p242_p9, %p239_p8 }
  0x1a   :  { %247 = shalt.err (!%p244_p10)
}
  0x1b   :  { %s248_s12 = scalar_lea.vmem %s366_s18, 384  ;;  %p253_p12 = scmp.lt.s32.totalorder %s366_s18, %s366_s18 }
  0x1c   :  { %p249_p11 = scmp.ne.s32.totalorder %s366_s18, %s248_s12  ;;  %p254_p13 = scmp.lt.s32.totalorder %s248_s12, %s248_s12 }
  0x1e   :  { %p255_p0 = por %p254_p13, %p253_p12 }
  0x20   :  { %p256_p1 = pnand %p255_p0, %p249_p11 }
  0x22   :  { %259 = shalt.err (!%p256_p1)
}
  0x23   :  { %28 = dma.hbm_to_vmem [thread:$0]  %s452_s0, 384, %s366_s18, [#allocation3], %s336_s27, %s336_s27, %s337_s28  }
  0x24   :  { %s338_s14 = smov [#allocation7]   ;;  %s339_s16 = smov [#allocation8]  }
  0x25   :  { %s54_s15 = sshll.u32 %s338_s14, 4  ;;  %s70_s17 = sshll.u32 %s339_s16, 4  ;;  %s55_s15 = int_to_ptr.vmem [resolvable:$true] %s54_s15  ;;  %s403_s17 = int_to_ptr.vmem [resolvable:$true] %s70_s17 }
  0x26   :  { %s260_s21 = scalar_lea.hbm %s454_s2, 384 }
  0x27   :  { %p261_p2 = scmp.ne.s32.totalorder %s454_s2, %s260_s21  ;;  %p264_p3 = scmp.lt.u32.totalorder %s260_s21, %s454_s2 }
  0x29   :  { %p266_p4 = pnand %p264_p3, %p261_p2 }
  0x2b   :  { %269 = shalt.err (!%p266_p4)
}
  0x2c   :  { %s270_s0 = scalar_lea.vmem %s55_s15, 384  ;;  %p275_p6 = scmp.lt.s32.totalorder %s55_s15, %s55_s15 }
  0x2d   :  { %p271_p5 = scmp.ne.s32.totalorder %s55_s15, %s270_s0  ;;  %p276_p7 = scmp.lt.s32.totalorder %s270_s0, %s270_s0 }
  0x2f   :  { %p277_p8 = por %p276_p7, %p275_p6 }
  0x31   :  { %p278_p9 = pnand %p277_p8, %p271_p5 }
  0x33   :  { %281 = shalt.err (!%p278_p9)
}
  0x34   :  { %60 = dma.hbm_to_vmem [thread:$0]  %s454_s2, 384, %s55_s15, [#allocation6], %s336_s27, %s336_s27, %s337_s28  }
  0x35   :  { %s282_s5 = scalar_lea.hbm %s455_s3, 384 }
  0x36   :  { %p283_p10 = scmp.ne.s32.totalorder %s455_s3, %s282_s5  ;;  %p286_p11 = scmp.lt.u32.totalorder %s282_s5, %s455_s3 }
  0x38   :  { %p288_p12 = pnand %p286_p11, %p283_p10 }
  0x3a   :  { %291 = shalt.err (!%p288_p12)
}
  0x3b   :  { %s292_s10 = scalar_lea.vmem %s403_s17, 384  ;;  %p297_p0 = scmp.lt.s32.totalorder %s403_s17, %s403_s17 }
  0x3c   :  { %p293_p13 = scmp.ne.s32.totalorder %s403_s17, %s292_s10  ;;  %p298_p1 = scmp.lt.s32.totalorder %s292_s10, %s292_s10 }
  0x3e   :  { %p299_p2 = por %p298_p1, %p297_p0 }
  0x40   :  { %p300_p3 = pnand %p299_p2, %p293_p13 }
  0x42   :  { %303 = shalt.err (!%p300_p3)
}
  0x43   :  { %76 = dma.hbm_to_vmem [thread:$0]  %s455_s3, 384, %s403_s17, [#allocation9], %s336_s27, %s336_s27, %s337_s28  }
  0x44   :  { %326 = dma.done.wait [#allocation3], 384  }
  0x45   :  { %327 = vsyncadd [#allocation3], 4294966912 }
  0x46   :  { %328 = dma.done.wait [#allocation6], 768  }
  0x47   :  { %329 = vsyncadd [#allocation6], 4294966528 }
  0x48   :  { %330 = dma.done.wait [#allocation9], 384  }
  0x49   :  { %331 = vsyncadd [#allocation9], 4294966912  ;;  %v108_v0 = vld [vmem:[#allocation7] sm:$0xff]  ;;  %v109_v1 = vld [vmem:[#allocation7 + $0x8] sm:$0xff]  ;;  %s340_s3 = smov [#allocation10]  }
  0x4a   :  { %v110_v2 = vld [vmem:[#allocation7 + $0x10] sm:$0xff]  ;;  %v111_v3 = vld [vmem:[#allocation8] sm:$0xff]  ;;  %v112_v4 = vld [vmem:[#allocation8 + $0x8] sm:$0xff]  ;;  %v120_v6 = vmul.f32 1.442695, %v108_v0  ;;  %s173_s27 = sshll.u32 %s340_s3, 4  ;;  %s174_s27 = int_to_ptr.vmem [resolvable:$true] %s173_s27 }
  0x4b   :  { %v113_v5 = vld [vmem:[#allocation8 + $0x10] sm:$0xff]  ;;  %v122_v7 = vmul.f32 1.442695, %v109_v1  ;;  %v124_v8 = vmul.f32 1.442695, %v110_v2  ;;  %v102_v24 = vld [vmem:[#allocation2] sm:$0xff]  ;;  %p309_p5 = scmp.lt.s32.totalorder %s174_s27, %s174_s27 }
  0x4c   :  { %192 = vpow2.f32 %v120_v6  ;;  %v126_v9 = vmul.f32 1.442695, %v111_v3  ;;  %v128_v10 = vmul.f32 1.442695, %v112_v4  ;;  %v130_v11 = vmul.f32 1.442695, %v113_v5 }
  0x4d   :  { %194 = vpow2.f32 %v122_v7  ;;  %v105_v25 = vld [vmem:[#allocation5] sm:$0xff]  ;;  %v103_v26 = vld [vmem:[#allocation2 + $0x8] sm:$0xff]  ;;  %v106_v27 = vld [vmem:[#allocation5 + $0x8] sm:$0xff]  ;;  %s304_s28 = scalar_lea.vmem %s174_s27, 128 }
  0x4e   :  { %196 = vpow2.f32 %v124_v8  ;;  %v104_v28 = vld [vmem:[#allocation2 + $0x10] sm:$0xff]  ;;  %v107_v29 = vld [vmem:[#allocation5 + $0x10] sm:$0xff]  ;;  %v114_v31 = vsub.f32 %v102_v24, %v105_v25  ;;  %v115_v33 = vsub.f32 %v103_v26, %v106_v27  ;;  %p305_p4 = scmp.ne.s32.totalorder %s174_s27, %s304_s28  ;;  %p310_p6 = scmp.lt.s32.totalorder %s304_s28, %s304_s28 }
  0x4f   :  { %198 = vpow2.f32 %v126_v9  ;;  %v116_v35 = vsub.f32 %v104_v28, %v107_v29 }
  0x50   :  { %200 = vpow2.f32 %v128_v10  ;;  %v117_v40 = vmul.f32 %v114_v31, %v114_v31  ;;  %v118_v44 = vmul.f32 %v115_v33, %v115_v33  ;;  %p311_p7 = por %p310_p6, %p309_p5 }
  0x51   :  { %202 = vpow2.f32 %v130_v11  ;;  %v119_v46 = vmul.f32 %v116_v35, %v116_v35 }
  0x52   :  { %p312_p8 = pnand %p311_p7, %p305_p4 }
  0x56   :  { %v193_v12 = vpop.eup %192 }
  0x57   :  { %v195_v13 = vpop.eup %194 }
  0x58   :  { %v197_v14 = vpop.eup %196 }
  0x59   :  { %v199_v15 = vpop.eup %198 }
  0x5a   :  { %v201_v16 = vpop.eup %200  ;;  %v132_v17 = vadd.f32 %v199_v15, %v193_v12 }
  0x5b   :  { %v203_v18 = vpop.eup %202  ;;  %v133_v19 = vadd.f32 %v201_v16, %v195_v13 }
  0x5c   :  { %v134_v20 = vadd.f32 %v203_v18, %v197_v14  ;;  %v135_v21 = vadd.f32 0.001, %v132_v17 }
  0x5d   :  { %v136_v22 = vadd.f32 0.001, %v133_v19 }
  0x5e   :  { %v137_v23 = vadd.f32 0.001, %v134_v20  ;;  %204 = vlog2.f32 %v135_v21 }
  0x5f   :  { %206 = vrcp.f32 %v135_v21 }
  0x60   :  { %208 = vrcp.f32 %v136_v22 }
  0x61   :  { %210 = vrcp.f32 %v137_v23 }
  0x62   :  { %212 = vlog2.f32 %v136_v22 }
  0x63   :  { %214 = vlog2.f32 %v137_v23 }
  0x68   :  { %v205_v30 = vpop.eup %204 }
  0x69   :  { %v207_v32 = vpop.eup %206  ;;  %v139_v47 = vmul.f32 0.6931472, %v205_v30 }
  0x6a   :  { %v209_v34 = vpop.eup %208  ;;  %v147_v36 = vmul.f32 %v207_v32, %v135_v21 }
  0x6b   :  { %v211_v37 = vpop.eup %210  ;;  %v148_v38 = vmul.f32 %v209_v34, %v136_v22 }
  0x6c   :  { %v213_v39 = vpop.eup %212  ;;  %v149_v41 = vmul.f32 %v211_v37, %v137_v23  ;;  %v150_v42 = vsub.f32 2.0, %v147_v36 }
  0x6d   :  { %v215_v43 = vpop.eup %214  ;;  %v151_v45 = vsub.f32 2.0, %v148_v38  ;;  %v141_v50 = vmul.f32 0.6931472, %v213_v39 }
  0x6e   :  { %v152_v48 = vsub.f32 2.0, %v149_v41  ;;  %v153_v49 = vmul.f32 %v207_v32, %v150_v42  ;;  %v143_v52 = vmul.f32 0.6931472, %v215_v43 }
  0x6f   :  { %v154_v51 = vmul.f32 %v209_v34, %v151_v45 }
  0x70   :  { %v155_v53 = vmul.f32 %v211_v37, %v152_v48  ;;  %v156_v54 = vmul.f32 %v153_v49, %v117_v40 }
  0x71   :  { %v157_v55 = vmul.f32 %v154_v51, %v118_v44 }
  0x72   :  { %v158_v56 = vmul.f32 %v155_v53, %v119_v46  ;;  %v159_v57 = vadd.f32 %v156_v54, %v139_v47 }
  0x73   :  { %v160_v58 = vadd.f32 %v157_v55, %v141_v50 }
  0x74   :  { %v161_v59 = vadd.f32 %v158_v56, %v143_v52 }
  0x75   :  { %v163_v60 = vadd.f32 %v160_v58, %v159_v57 }
  0x77   :  { %v164_v61 = vadd.f32 %v163_v60, %v161_v59 }
  0x79   :  { %166 = vst [vmem:[#allocation10] sm:$0xff] %v164_v61 }
  0x7a   :  { %315 = shalt.err (!%p312_p8)
}
  0x7b   :  { %s316_s13 = scalar_lea.hbm %s456_s4, 128 }
  0x7c   :  { %p317_p9 = scmp.ne.s32.totalorder %s456_s4, %s316_s13  ;;  %p320_p10 = scmp.lt.u32.totalorder %s316_s13, %s456_s4 }
  0x7e   :  { %p322_p11 = pnand %p320_p10, %p317_p9 }
  0x80   :  { %325 = shalt.err (!%p322_p11)
}
  0x81   :  { %176 = dma.vmem_to_hbm [thread:$0]  %s174_s27, 128, %s456_s4, [#allocation4]  }
  0x82   :  { %332 = dma.done.wait [#allocation4], 128  }
  0x83   :  { %333 = vsyncadd [#allocation4], 4294967168 }
  0x84   :  { %180 = vsyncpa [#allocation3], 1 }
  0x85   :  { %181 = vsyncpa [#allocation6], 1 }
  0x86   :  { %182 = vsyncpa [#allocation9], 1 }
  0x87   :  { %183 = vsyncpa [#allocation4], 1 }

</bundles_post_ra>
